<compile_context>
chip_gen: v5e
topology: v5e:2x2
jax: 0.10.0
libtpu: 0.0.40
codegen_flags: <defaults>
</compile_context>

<pallas_src>
import functools
import math

import numpy as np

import jax
import jax.numpy as jnp
from jax import lax
from jax.experimental import pallas as pl
from jax.experimental.pallas import tpu as pltpu

_HIGH = lax.Precision.HIGHEST


def _mha_fused_kernel(x_ref, w_ref, mask_k_ref, ones_bd_ref, mask_v_ref, o_ref,
                      *, num_heads, d_out_kq, d_out_v, seq_len):
    H, S, dkq, dv = num_heads, seq_len, d_out_kq, d_out_v

    x = x_ref[...]          # (S, d_in)               f32
    w = w_ref[...]          # (d_in, H*(2*dkq + dv))  f32

    # 1) One fused MXU pass for every Q/K/V projection of every head.
    qkv = jnp.dot(x, w, preferred_element_type=jnp.float32, precision=_HIGH)

    inv_sqrt = 1.0 / math.sqrt(dkq)
    q_all = qkv[:, : H * dkq] * inv_sqrt            # (S, H*dkq)  scale folded into q
    k_all = qkv[:, H * dkq: 2 * H * dkq]            # (S, H*dkq)
    v_all = qkv[:, 2 * H * dkq:]                    # (S, H*dv)

    # 2) All-head scores in ONE matmul against a block-diagonal K:
    #    rows = head-tiled k slab, off-diagonal head blocks zeroed by a 0/1 mask.
    k_bd = jnp.concatenate([k_all] * H, axis=0) * mask_k_ref[...]   # (H*S, H*dkq)
    # scores[i, h*S + j] = (q_h[i] . k_h[j]) / sqrt(dkq)            -> (S, H*S)
    scores = lax.dot_general(q_all, k_bd, (((1,), (1,)), ((), ())),
                             preferred_element_type=jnp.float32, precision=_HIGH)

    # 3) Per-head softmax with no reshape/relayout:
    #    softmax is shift-invariant -> the row-global max is an exact stand-in for
    #    the per-head max (scores here are bounded, no underflow concern); the
    #    per-head sums come back already broadcast from one block-of-ones matmul.
    m = jnp.max(scores, axis=-1, keepdims=True)                     # (S, 1)
    e = jnp.exp(scores - m)                                         # (S, H*S)
    denom = jnp.dot(e, ones_bd_ref[...],                            # (S, H*S)
                    preferred_element_type=jnp.float32, precision=_HIGH)
    attn = e / denom                                                # (S, H*S)

    # 4) attn @ block-diagonal V: ONE matmul producing the head-concatenated,
    #    lane-dense (S, H*dv) output slab, stored unmasked.
    v_bd = jnp.concatenate([v_all] * H, axis=0) * mask_v_ref[...]   # (H*S, H*dv)
    out = jnp.dot(attn, v_bd, preferred_element_type=jnp.float32, precision=_HIGH)
    o_ref[...] = out.astype(o_ref.dtype)


def fuse_multi_head_weights(w_query, w_key, w_value):
    """Init-time only (parameters, not activations): pack per-head (H, d_in, d)
    weights head-major into one (d_in, H*(2*d_kq + d_v)) projection matrix:
    columns [Wq(h=0..H-1) | Wk(h=0..H-1) | Wv(h=0..H-1)]."""
    H, d_in, d_kq = w_query.shape
    d_v = w_value.shape[-1]
    wq = jnp.transpose(w_query, (1, 0, 2)).reshape(d_in, H * d_kq)
    wk = jnp.transpose(w_key, (1, 0, 2)).reshape(d_in, H * d_kq)
    wv = jnp.transpose(w_value, (1, 0, 2)).reshape(d_in, H * d_v)
    return jnp.concatenate([wq, wk, wv], axis=-1)


def _head_block_mask(rows_per_block, cols_per_block, num_blocks):
    """Trace-time numpy constant: 1.0 where row-block == col-block, else 0.0."""
    r = np.arange(num_blocks * rows_per_block)[:, None] // rows_per_block
    c = np.arange(num_blocks * cols_per_block)[None, :] // cols_per_block
    return jnp.asarray((r == c).astype(np.float32))


@functools.partial(jax.jit, static_argnames=("num_heads", "d_out_kq", "d_out_v"))
def multi_head_attention(x, w_fused, num_heads, d_out_kq, d_out_v):
    """x: (S, d_in); w_fused: (d_in, H*(2*d_kq + d_v)). Returns (S, H*d_out_v)."""
    S, _ = x.shape
    H = num_heads

    # Compile-time 0/1 block masks (tiny; become baked constants under jit).
    mask_k = _head_block_mask(S, d_out_kq, H)    # (H*S, H*d_kq)
    ones_bd = _head_block_mask(S, S, H)          # (H*S, H*S)
    mask_v = _head_block_mask(S, d_out_v, H)     # (H*S, H*d_v)

    kernel = functools.partial(
        _mha_fused_kernel, num_heads=H, d_out_kq=d_out_kq,
        d_out_v=d_out_v, seq_len=S)

    vmem_spec = pl.BlockSpec(memory_space=pltpu.MemorySpace.VMEM)

    # Single kernel invocation; the whole (tiny) problem lives in VMEM.
    # TODO(synk): for real sequence lengths (S >~ 2k) switch to kv-tiled online
    # softmax (tk ~ 512-1024, sized against ~32 MiB scoped VMEM on v7x) and add a
    # leading batch grid axis marked "parallel" to use v7x's second TensorCore.
    return pl.pallas_call(
        kernel,
        out_shape=jax.ShapeDtypeStruct((S, H * d_out_v), x.dtype),
        in_specs=[vmem_spec, vmem_spec, vmem_spec, vmem_spec, vmem_spec],
        out_specs=vmem_spec,
    )(x, w_fused, mask_k, ones_bd, mask_v)


def _reference(x, w_query, w_key, w_value):
    H, _, d_kq = w_query.shape
    outs = []
    for h in range(H):
        q = jnp.dot(x, w_query[h], precision=_HIGH)
        k = jnp.dot(x, w_key[h], precision=_HIGH)
        v = jnp.dot(x, w_value[h], precision=_HIGH)
        s = jnp.dot(q, k.T, precision=_HIGH) / math.sqrt(d_kq)
        a = jax.nn.softmax(s, axis=-1)
        outs.append(jnp.dot(a, v, precision=_HIGH))
    return jnp.concatenate(outs, axis=-1)


if __name__ == "__main__":
    # Module hyper-params (deterministic, synthetic — no checkpoint load).
    seq, d_in, d_out_kq, d_out_v, num_heads = 8, 16, 16, 32, 4

    key = jax.random.PRNGKey(0)
    kx, kq, kk, kv = jax.random.split(key, 4)
    x = jax.random.uniform(kx, (seq, d_in), dtype=jnp.float32)
    # torch.rand(d_in, d_out) per head -> uniform [0, 1)
    w_query = jax.random.uniform(kq, (num_heads, d_in, d_out_kq), dtype=jnp.float32)
    w_key = jax.random.uniform(kk, (num_heads, d_in, d_out_kq), dtype=jnp.float32)
    w_value = jax.random.uniform(kv, (num_heads, d_in, d_out_v), dtype=jnp.float32)

    # Init-time weight fusion (once), outside the per-call path.
    w_fused = jax.block_until_ready(fuse_multi_head_weights(w_query, w_key, w_value))

    out = multi_head_attention(x, w_fused, num_heads=num_heads,
                               d_out_kq=d_out_kq, d_out_v=d_out_v)
    out = jax.block_until_ready(out)

    ref = _reference(x, w_query, w_key, w_value)
    assert out.shape == (seq, num_heads * d_out_v), out.shape
    assert jnp.allclose(out, ref, atol=1e-5, rtol=1e-5), "mismatch vs reference"

    print("KERNEL_OK")
</pallas_src>

<mosaic_0001>
module attributes {stable_mosaic.version = 11 : i64} {
  func.func @_mha_fused_kernel(%arg0: memref<8x16xf32, #tpu.memory_space<vmem>>, %arg1: memref<16x256xf32, #tpu.memory_space<vmem>>, %arg2: memref<32x64xf32, #tpu.memory_space<vmem>>, %arg3: memref<32x32xf32, #tpu.memory_space<vmem>>, %arg4: memref<32x128xf32, #tpu.memory_space<vmem>>, %arg5: memref<8x128xf32, #tpu.memory_space<vmem>>) attributes {dimension_semantics = [], scalar_prefetch = 0 : i64, scratch_operands = 0 : i64, tpu.core_type = #tpu.core_type<tc>} {
    %c0 = arith.constant 0 : index
    %c0_0 = arith.constant 0 : index
    %0 = vector.load %arg0[%c0, %c0_0] : memref<8x16xf32, #tpu.memory_space<vmem>>, vector<8x16xf32>
    %c0_1 = arith.constant 0 : index
    %c0_2 = arith.constant 0 : index
    %1 = vector.load %arg1[%c0_1, %c0_2] : memref<16x256xf32, #tpu.memory_space<vmem>>, vector<16x256xf32>
    %cst = arith.constant dense<0.000000e+00> : vector<8x256xf32>
    %2 = tpu.matmul %0, %1, %cst {dimension_numbers = #tpu.dot_dimension_numbers<[1], [0], [0], [1], [0, 0, 1, 1], [], []>, precision = #tpu.contract_precision<fp32>} : vector<8x16xf32>, vector<16x256xf32>, vector<8x256xf32> -> vector<8x256xf32>
    %3 = vector.extract_strided_slice %2 {offsets = [0, 0], sizes = [8, 64], strides = [1, 1]} : vector<8x256xf32> to vector<8x64xf32>
    %cst_3 = arith.constant 2.500000e-01 : f32
    %4 = vector.broadcast %cst_3 : f32 to vector<8x64xf32>
    %5 = arith.mulf %3, %4 : vector<8x64xf32>
    %6 = vector.extract_strided_slice %2 {offsets = [0, 64], sizes = [8, 64], strides = [1, 1]} : vector<8x256xf32> to vector<8x64xf32>
    %7 = vector.extract_strided_slice %2 {offsets = [0, 128], sizes = [8, 128], strides = [1, 1]} : vector<8x256xf32> to vector<8x128xf32>
    %8 = tpu.concatenate %6, %6, %6, %6 in 0 : vector<8x64xf32>, vector<8x64xf32>, vector<8x64xf32>, vector<8x64xf32> -> vector<32x64xf32>
    %c0_4 = arith.constant 0 : index
    %c0_5 = arith.constant 0 : index
    %9 = vector.load %arg2[%c0_4, %c0_5] : memref<32x64xf32, #tpu.memory_space<vmem>>, vector<32x64xf32>
    %10 = arith.mulf %8, %9 : vector<32x64xf32>
    %cst_6 = arith.constant dense<0.000000e+00> : vector<8x32xf32>
    %11 = tpu.matmul %5, %10, %cst_6 {dimension_numbers = #tpu.dot_dimension_numbers<[1], [1], [0], [0], [0, 0, 1, 0], [], []>, precision = #tpu.contract_precision<fp32>} : vector<8x64xf32>, vector<32x64xf32>, vector<8x32xf32> -> vector<8x32xf32>
    %cst_7 = arith.constant dense<0xFF800000> : vector<8xf32>
    %12 = vector.multi_reduction <maximumf>, %11, %cst_7 [1] : vector<8x32xf32> to vector<8xf32>
    %13 = vector.shape_cast %12 : vector<8xf32> to vector<8x1xf32>
    %14 = vector.broadcast %13 : vector<8x1xf32> to vector<8x32xf32>
    %15 = arith.subf %11, %14 : vector<8x32xf32>
    %16 = math.exp %15 : vector<8x32xf32>
    %c0_8 = arith.constant 0 : index
    %c0_9 = arith.constant 0 : index
    %17 = vector.load %arg3[%c0_8, %c0_9] : memref<32x32xf32, #tpu.memory_space<vmem>>, vector<32x32xf32>
    %cst_10 = arith.constant dense<0.000000e+00> : vector<8x32xf32>
    %18 = tpu.matmul %16, %17, %cst_10 {dimension_numbers = #tpu.dot_dimension_numbers<[1], [0], [0], [1], [0, 0, 1, 1], [], []>, precision = #tpu.contract_precision<fp32>} : vector<8x32xf32>, vector<32x32xf32>, vector<8x32xf32> -> vector<8x32xf32>
    %19 = arith.divf %16, %18 : vector<8x32xf32>
    %20 = tpu.concatenate %7, %7, %7, %7 in 0 : vector<8x128xf32>, vector<8x128xf32>, vector<8x128xf32>, vector<8x128xf32> -> vector<32x128xf32>
    %c0_11 = arith.constant 0 : index
    %c0_12 = arith.constant 0 : index
    %21 = vector.load %arg4[%c0_11, %c0_12] : memref<32x128xf32, #tpu.memory_space<vmem>>, vector<32x128xf32>
    %22 = arith.mulf %20, %21 : vector<32x128xf32>
    %cst_13 = arith.constant dense<0.000000e+00> : vector<8x128xf32>
    %23 = tpu.matmul %19, %22, %cst_13 {dimension_numbers = #tpu.dot_dimension_numbers<[1], [0], [0], [1], [0, 0, 1, 1], [], []>, precision = #tpu.contract_precision<fp32>} : vector<8x32xf32>, vector<32x128xf32>, vector<8x128xf32> -> vector<8x128xf32>
    %c0_14 = arith.constant 0 : index
    %c0_15 = arith.constant 0 : index
    %24 = vector.load %arg5[%c0_14, %c0_15] : memref<8x128xf32, #tpu.memory_space<vmem>>, vector<8x128xf32>
    tpu.vector_store %arg5[%c0_14, %c0_15], %23 {strides = array<i32>} : memref<8x128xf32, #tpu.memory_space<vmem>>, vector<8x128xf32>,
    return
  }
}

</mosaic_0001>

<bundles_post_ra>
// kernel: multi_head_attention.1
= control target key start
LH: loop header
LB: loop body
LE: loop exit
PB: predicated region body
PF: predicated region fallthrough
CT: control target
= control target key end

     0   :  { %10 = vsyncpa [#allocation3], 0  ;;  %s1416_s0 = inlined_call_operand.hbm [shape: f32[8,16], index: 0, kind: input, shape index: {}]   ;;  %s1417_s1 = inlined_call_operand.hbm [shape: f32[16,256], index: 1, kind: input, shape index: {}]   ;;  %s1418_s2 = inlined_call_operand.hbm [shape: f32[32,64], index: 2, kind: input, shape index: {}]   ;;  %s1419_s3 = inlined_call_operand.hbm [shape: f32[32,32], index: 3, kind: input, shape index: {}]   ;;  %s1420_s4 = inlined_call_operand.hbm [shape: f32[32,128], index: 4, kind: input, shape index: {}]   ;;  %s1421_s5 = inlined_call_operand.hbm [shape: f32[8,128], index: 5, kind: output, shape index: {}]  }
   0x1   :  { %11 = vsyncpa [#allocation6], 0 }
   0x2   :  { %12 = vsyncpa [#allocation9], 0  ;;  %s29_s20 = sshll.u32 %s1417_s1, 4  ;;  %s30_s20 = int_to_ptr.hbm [resolvable:$true] %s29_s20 }
   0x3   :  { %13 = vsyncpa [#allocation4], 0  ;;  %s1255_s21 = smov [#allocation5]   ;;  %s1256_s23 = smov 256  }
   0x4   :  { %s31_s22 = sshll.u32 %s1255_s21, 4  ;;  %s1257_s24 = smov 16   ;;  %s32_s22 = int_to_ptr.vmem [resolvable:$true] %s31_s22 }
   0x5   :  { %37 = dma.hbm_to_vmem [thread:$0]  %s30_s20, 512, %s32_s22, [#allocation6], %s1256_s23, %s1256_s23, %s1257_s24  }
   0x6   :  { %s55_s27 = sshll.u32 %s1419_s3, 4  ;;  %s1258_s28 = smov [#allocation8]   ;;  %s56_s27 = int_to_ptr.hbm [resolvable:$true] %s55_s27 }
   0x7   :  { %s57_s29 = sshll.u32 %s1258_s28, 4  ;;  %s19_s7 = sshll.u32 %s1416_s0, 4  ;;  %s58_s29 = int_to_ptr.vmem [resolvable:$true] %s57_s29  ;;  %s20_s7 = int_to_ptr.hbm [resolvable:$true] %s19_s7 }
   0x8   :  { %s1259_s1 = smov 128   ;;  %s1260_s8 = smov 8  }
   0x9   :  { %63 = dma.hbm_to_vmem [thread:$0]  %s56_s27, 512, %s58_s29, [#allocation9], %s1259_s1, %s1259_s1, %s1260_s8  }
   0xa   :  { %s42_s11 = sshll.u32 %s1418_s2, 4  ;;  %s1261_s12 = smov [#allocation2]   ;;  %s43_s11 = int_to_ptr.hbm [resolvable:$true] %s42_s11 }
   0xb   :  { %s21_s13 = sshll.u32 %s1261_s12, 4  ;;  %s1262_s3 = smov [#allocation7]   ;;  %s22_s13 = int_to_ptr.vmem [resolvable:$true] %s21_s13 }
   0xc   :  { %24 = dma.hbm_to_vmem [thread:$0]  %s20_s7, 128, %s22_s13, [#allocation3]  }
   0xd   :  { %s44_s14 = sshll.u32 %s1262_s3, 4  ;;  %s68_s0 = sshll.u32 %s1420_s4, 4  ;;  %s45_s14 = int_to_ptr.vmem [resolvable:$true] %s44_s14  ;;  %s69_s0 = int_to_ptr.hbm [resolvable:$true] %s68_s0 }
   0xe   :  { %50 = dma.hbm_to_vmem [thread:$0]  %s43_s11, 512, %s45_s14, [#allocation6], %s1259_s1, %s1259_s1, %s1260_s8  }
   0xf   :  { %s1263_s17 = smov [#allocation10]  }
  0x10   :  { %s70_s18 = sshll.u32 %s1263_s17, 4  ;;  %s71_s18 = int_to_ptr.vmem [resolvable:$true] %s70_s18 }
  0x11   :  { %76 = dma.hbm_to_vmem [thread:$0]  %s69_s0, 512, %s71_s18, [#allocation9], %s1259_s1, %s1259_s1, %s1260_s8  }
  0x12   :  { %1247 = dma.done.wait [#allocation3], 128  }
  0x13   :  { %1248 = vsyncadd [#allocation3], 4294967168 }
  0x14   :  { %1249 = dma.done.wait [#allocation6], 1024  }
  0x15   :  { %1250 = vsyncadd [#allocation6], 4294966272 }
  0x16   :  { %1251 = dma.done.wait [#allocation9], 1024  }
  0x17   :  { %1252 = vsyncadd [#allocation9], 4294966272  ;;  %vm102_vm0 = vcmask 130048   ;;  %v100_v0 = vld [vmem:[#allocation5 + $0x10] sm:$0xff]  ;;  %v98_v1 = vld [vmem:[#allocation5] sm:$0xff]  ;;  %s1264_s2 = smov 64  }
  0x18   :  { %v97_v2 = vld [vmem:[#allocation2] sm:$0xff]  ;;  %v120_v3 = vand.u32 4294901760, %v100_v0  ;;  %v122_v4 = vand.u32 4294901760, %v98_v1  ;;  %v426_v7 = vld [vmem:[#allocation7 + $0x8] sm:$0xff]  ;;  %v427_v17 = vld [vmem:[#allocation7 + $0x10] sm:$0xff]  ;;  %vm461_vm1 = vcmask 523264  }
  0x19   :  { %v104_v5 = vsel %vm102_vm0, %v97_v2, 0  ;;  %v428_v6 = vld [vmem:[#allocation7 + $0x18] sm:$0xff]  ;;  %435 = vrot.lane.b32.xlu1 %v426_v7, %s1264_s2  ;;  %v425_v18 = vld [vmem:[#allocation7] sm:$0xff]  ;;  %v99_v24 = vld [vmem:[#allocation5 + $0x8] sm:$0xff]  ;;  %vm658_vm2 = vcmask 261120   ;;  %s1265_s4 = smov [#allocation11]  }
  0x1a   :  { %v1311_v8 = vand.u32 4294901760, %v104_v5  ;;  %439 = vrot.lane.b32.xlu0 %v428_v6, %s1264_s2  ;;  %v148_v9 = vsub.f32 %v100_v0, %v120_v3  ;;  %121 = vmatpush.msra.mxu0 %v120_v3  ;;  %v154_v10 = vsub.f32 %v98_v1, %v122_v4  ;;  %v101_v23 = vld [vmem:[#allocation5 + $0x18] sm:$0xff]  ;;  %v281_v26 = vand.u32 4294901760, %v99_v24  ;;  %s1074_s19 = sshll.u32 %s1265_s4, 4  ;;  %s1076_s22 = sshll.u32 %s1421_s5, 4  ;;  %s1075_s19 = int_to_ptr.vmem [resolvable:$true] %s1074_s19  ;;  %s1077_s22 = int_to_ptr.hbm [resolvable:$true] %s1076_s22 }
  0x1b   :  { %205 = vmatpush.msra.mxu3 %v120_v3  ;;  %v279_v25 = vand.u32 4294901760, %v101_v23 }
  0x1c   :  { %v125_v11 = vsub.f32 %v104_v5, %v1311_v8  ;;  %180 = vmatpush.msra.mxu2 %v148_v9  ;;  %123 = vmatpush.msra.mxu0 %v122_v4  ;;  %v149_v12 = vand.u32 4294901760, %v148_v9  ;;  %v155_v13 = vand.u32 4294901760, %v154_v10  ;;  %v313_v28 = vsub.f32 %v99_v24, %v281_v26 }
  0x1d   :  { %207 = vmatpush.msra.mxu3 %v122_v4  ;;  %v307_v27 = vsub.f32 %v101_v23, %v279_v25 }
  0x1e   :  { %v126_v14 = vand.u32 4294901760, %v125_v11  ;;  %183 = vmatpush.msra.mxu2 %v154_v10  ;;  %v150_v15 = vsub.f32 %v148_v9, %v149_v12  ;;  %v156_v16 = vsub.f32 %v154_v10, %v155_v13  ;;  %232 = vmatpush.msrb.mxu0 %v149_v12  ;;  %v314_v30 = vand.u32 4294901760, %v313_v28 }
  0x1f   :  { %186 = vmatmul.f32.vlgmr.msra.gmra.mxu2 %v125_v11  ;;  %v308_v29 = vand.u32 4294901760, %v307_v27 }
  0x20   :  { %v127_v19 = vsub.f32 %v125_v11, %v126_v14  ;;  %211 = vmatmul.f32.vlgmr.msra.gmra.mxu3 %v126_v14  ;;  %v151_v20 = vand.u32 4294901760, %v150_v15  ;;  %v157_v21 = vand.u32 4294901760, %v156_v16  ;;  %236 = vmatpush.msrb.mxu0 %v155_v13  ;;  %v315_v32 = vsub.f32 %v313_v28, %v314_v30 }
  0x21   :  { %433 = vrot.lane.b32.xlu1 %v425_v18, %s1264_s2  ;;  %280 = vmatpush.msrb.mxu2 %v279_v25  ;;  %v309_v31 = vsub.f32 %v307_v27, %v308_v29 }
  0x22   :  { %v128_v22 = vand.u32 4294901760, %v127_v19  ;;  %437 = vrot.lane.b32.xlu0 %v427_v17, %s1264_s2  ;;  %152 = vmatpush.msra.mxu1 %v151_v20  ;;  %v316_v36 = vand.u32 4294901760, %v315_v32 }
  0x23   :  { %282 = vmatpush.msrb.mxu2 %v281_v26  ;;  %v310_v35 = vand.u32 4294901760, %v309_v31 }
  0x24   :  { %129 = vmatmul.f32.vlgmr.msra.gmra.mxu0 %v128_v22  ;;  %158 = vmatpush.msra.mxu1 %v157_v21 }
  0x25   :  { %160 = vmatmul.f32.vlgmr.msra.gmra.mxu1 %v1311_v8  ;;  %339 = vmatpush.msra.mxu0 %v307_v27 }
  0x26   :  { %257 = vmatpush.msrb.mxu1 %v120_v3  ;;  %391 = vmatpush.msra.mxu2 %v308_v29 }
  0x27   :  { %288 = vmatmul.f32.vlgmr.msrb.gmra.mxu2 %v128_v22  ;;  %342 = vmatpush.msra.mxu0 %v313_v28 }
  0x28   :  { %259 = vmatpush.msrb.mxu1 %v122_v4  ;;  %395 = vmatpush.msra.mxu2 %v314_v30 }
  0x29   :  { %311 = vmatpush.msrb.mxu3 %v310_v35 }
  0x2a   :  { %364 = vmatpush.msra.mxu1 %v279_v25 }
  0x2b   :  { %317 = vmatpush.msrb.mxu3 %v316_v36  ;;  %v668_v36 = vld [vmem:[#allocation8 + $0x18] sm:$0xff] }
  0x2c   :  { %238 = vmatmul.f32.vlgmr.msrb.gmra.mxu0 %v1311_v8  ;;  %366 = vmatpush.msra.mxu1 %v281_v26 }
  0x2d   :  { %261 = vmatmul.f32.vlgmr.msrb.gmra.mxu1 %v1311_v8  ;;  %416 = vmatpush.msra.mxu3 %v279_v25 }
  0x2e   :  { %319 = vmatmul.f32.vlgmr.msrb.gmra.mxu3 %v1311_v8 }
  0x2f   :  { %397 = vmatmul.f32.vlgmr.msra.gmra.mxu2 %v1311_v8  ;;  %418 = vmatpush.msra.mxu3 %v281_v26 }
  0x34   :  { %345 = vmatmul.f32.vlgmr.msra.gmra.mxu0 %v125_v11 }
  0x35   :  { %370 = vmatmul.f32.vlgmr.msra.gmra.mxu1 %v126_v14 }
  0x36   :  { %420 = vmatmul.f32.vlgmr.msra.gmra.mxu3 %v1311_v8 }
  0x8b   :  { %v436_v34 = vpop.permute.xlu1 %435 }
  0x8c   :  { %v440_v43 = vpop.permute.xlu0 %439 }
  0x93   :  { %v434_v47 = vpop.permute.xlu1 %433 }
  0x94   :  { %v438_v52 = vpop.permute.xlu0 %437 }
  0xa1   :  { %v130_v33 = vpop.f32.mrf.mxu0 }
  0xa2   :  { %v161_v37 = vpop.f32.mrf.mxu1  ;;  %v187_v38 = vpop.f32.mrf.mxu2 }
  0xa3   :  { %v162_v39 = vadd.f32 %v161_v37, %v130_v33  ;;  %v212_v40 = vpop.f32.mrf.mxu3  ;;  %v875_v37 = vld [vmem:[#allocation10 + $0x18] sm:$0xff] }
  0xa5   :  { %v188_v41 = vadd.f32 %v187_v38, %v162_v39  ;;  %v1333_v38 = vand.u32 4294901760, %v668_v36  ;;  %v667_v39 = vld [vmem:[#allocation8 + $0x10] sm:$0xff] }
  0xa7   :  { %v213_v42 = vadd.f32 %v212_v40, %v188_v41  ;;  %v1336_v40 = vsub.f32 %v668_v36, %v1333_v38  ;;  %v1339_v41 = vand.u32 4294901760, %v667_v39 }
  0xa9   :  { %v239_v44 = vpop.f32.mrf.mxu0 }
  0xaa   :  { %v240_v45 = vadd.f32 %v239_v44, %v213_v42  ;;  %v262_v46 = vpop.f32.mrf.mxu1  ;;  %v289_v26 = vpop.f32.mrf.mxu2  ;;  %v715_v44 = vand.u32 4294901760, %v1336_v40 }
  0xac   :  { %v263_v48 = vadd.f32 %v262_v46, %v240_v45  ;;  %v720_v45 = vsub.f32 %v667_v39, %v1339_v41 }
  0xae   :  { %v445_v49 = vmul.f32 %v434_v47, %v263_v48  ;;  %v448_v50 = vmul.f32 %v440_v43, %v263_v48  ;;  %v446_v51 = vmul.f32 %v436_v34, %v263_v48  ;;  %v447_v53 = vmul.f32 %v438_v52, %v263_v48  ;;  %v666_v43 = vld [vmem:[#allocation8 + $0x8] sm:$0xff]  ;;  %v665_v47 = vld [vmem:[#allocation8] sm:$0xff] }
  0xaf   :  { %v424_v0 = vmul.f32 0.25, %v263_v48  ;;  %v1345_v46 = vand.u32 4294901760, %v666_v43  ;;  %v721_v48 = vand.u32 4294901760, %v720_v45 }
  0xb0   :  { %459 = vrot.lane.b32.xlu2 %v448_v50, %s1264_s2  ;;  %453 = vrot.lane.b32.xlu1 %v445_v49, %s1264_s2  ;;  %v1350_v50 = vand.u32 4294901760, %v665_v47 }
  0xb1   :  { %455 = vrot.lane.b32.xlu0 %v446_v51, %s1264_s2  ;;  %v463_v3 = vsel %vm461_vm1, %v424_v0, 0  ;;  %v320_v25 = vpop.f32.mrf.mxu3  ;;  %v346_v28 = vpop.f32.mrf.mxu0  ;;  %v726_v49 = vsub.f32 %v666_v43, %v1345_v46 }
  0xb2   :  { %v493_v5 = vand.u32 4294901760, %v463_v3  ;;  %v321_v27 = vadd.f32 %v320_v25, %v289_v26  ;;  %v371_v30 = vpop.f32.mrf.mxu1  ;;  %v398_v32 = vpop.f32.mrf.mxu2 }
  0xb3   :  { %v727_v52 = vand.u32 4294901760, %v726_v49 }
  0xb4   :  { %v494_v7 = vsub.f32 %v463_v3, %v493_v5  ;;  %v347_v29 = vadd.f32 %v346_v28, %v321_v27 }
  0xb6   :  { %v495_v13 = vand.u32 4294901760, %v494_v7  ;;  %v372_v31 = vadd.f32 %v371_v30, %v347_v29 }
  0xb8   :  { %457 = vrot.lane.b32.xlu2 %v447_v53, %s1264_s2  ;;  %v496_v17 = vsub.f32 %v494_v7, %v495_v13  ;;  %v399_v33 = vadd.f32 %v398_v32, %v372_v31  ;;  %v732_v53 = vsub.f32 %v665_v47, %v1350_v50 }
  0xb9   :  { %v421_v34 = vpop.f32.mrf.mxu3 }
  0xba   :  { %v497_v21 = vand.u32 4294901760, %v496_v17  ;;  %v422_v35 = vadd.f32 %v421_v34, %v399_v33 }
  0xbc   :  { %v879_v42 = vmul.f32 %v875_v37, %v422_v35 }
  0xbe   :  { %v1352_v51 = vand.u32 4294901760, %v879_v42 }
 0x10a   :  { %v460_v54 = vpop.permute.xlu2 %459 }
 0x10b   :  { %v471_v55 = vsel %vm461_vm1, %v460_v54, 0  ;;  %v874_v54 = vld [vmem:[#allocation10 + $0x10] sm:$0xff] }
 0x10c   :  { %v485_v56 = vand.u32 4294901760, %v471_v55 }
 0x10e   :  { %v515_v57 = vsub.f32 %v471_v55, %v485_v56  ;;  %486 = vmatpush.xpose.msrb.mxu0 %v485_v56  ;;  %586 = vmatpush.xpose.msrb.mxu3 %v485_v56  ;;  %v878_v55 = vmul.f32 %v874_v54, %v422_v35 }
 0x110   :  { %v516_v58 = vand.u32 4294901760, %v515_v57  ;;  %557 = vmatpush.xpose.msrb.mxu2 %v515_v57 }
 0x112   :  { %v517_v59 = vsub.f32 %v515_v57, %v516_v58  ;;  %v458_v60 = vpop.permute.xlu2 %457  ;;  %v873_v57 = vld [vmem:[#allocation10 + $0x8] sm:$0xff] }
 0x113   :  { %v469_v61 = vsel %vm461_vm1, %v458_v60, 0  ;;  %v1363_v60 = vand.u32 4294901760, %v878_v55 }
 0x114   :  { %v518_v62 = vand.u32 4294901760, %v517_v59  ;;  %v487_v63 = vand.u32 4294901760, %v469_v61  ;;  %v1361_v59 = vsub.f32 %v879_v42, %v1352_v51 }
 0x116   :  { %v521_v1 = vsub.f32 %v469_v61, %v487_v63  ;;  %488 = vmatpush.xpose.msrb.mxu0 %v487_v63  ;;  %519 = vmatpush.xpose.msrb.mxu1 %v518_v62  ;;  %v877_v61 = vmul.f32 %v873_v57, %v422_v35  ;;  %v926_v27 = vand.u32 4294901760, %v1361_v59 }
 0x117   :  { %588 = vmatpush.xpose.msrb.mxu3 %v487_v63 }
 0x118   :  { %v522_v2 = vand.u32 4294901760, %v521_v1  ;;  %560 = vmatpush.xpose.msrb.mxu2 %v521_v1  ;;  %v1370_v0 = vand.u32 4294901760, %v877_v61  ;;  %v927_v29 = vsub.f32 %v1361_v59, %v926_v27 }
 0x11a   :  { %v523_v4 = vsub.f32 %v521_v1, %v522_v2  ;;  %v928_v36 = vand.u32 4294901760, %v927_v29 }
 0x11c   :  { %v524_v6 = vand.u32 4294901760, %v523_v4 }
 0x11e   :  { %525 = vmatpush.xpose.msrb.mxu1 %v524_v6 }
 0x122   :  { %v454_v8 = vpop.permute.xlu1 %453 }
 0x123   :  { %v456_v9 = vpop.permute.xlu0 %455  ;;  %v465_v10 = vsel %vm461_vm1, %v454_v8, 0 }
 0x124   :  { %v467_v11 = vsel %vm461_vm1, %v456_v9, 0  ;;  %v491_v12 = vand.u32 4294901760, %v465_v10 }
 0x125   :  { %v489_v14 = vand.u32 4294901760, %v467_v11 }
 0x126   :  { %v533_v15 = vsub.f32 %v465_v10, %v491_v12 }
 0x127   :  { %v527_v16 = vsub.f32 %v467_v11, %v489_v14  ;;  %490 = vmatpush.xpose.msrb.mxu0 %v489_v14  ;;  %590 = vmatpush.xpose.msrb.mxu3 %v489_v14 }
 0x128   :  { %v534_v19 = vand.u32 4294901760, %v533_v15 }
 0x129   :  { %v528_v18 = vand.u32 4294901760, %v527_v16  ;;  %563 = vmatpush.xpose.msrb.mxu2 %v527_v16 }
 0x12a   :  { %v535_v23 = vsub.f32 %v533_v15, %v534_v19 }
 0x12b   :  { %492 = vmatpush.xpose.msrb.mxu0 %v491_v12  ;;  %592 = vmatpush.xpose.msrb.mxu3 %v491_v12  ;;  %v529_v20 = vsub.f32 %v527_v16, %v528_v18  ;;  %v716_v16 = vsub.f32 %v1336_v40, %v715_v44 }
 0x12c   :  { %v536_v24 = vand.u32 4294901760, %v535_v23 }
 0x12d   :  { %566 = vmatpush.xpose.msrb.mxu2 %v533_v15  ;;  %v530_v22 = vand.u32 4294901760, %v529_v20  ;;  %v717_v17 = vand.u32 4294901760, %v716_v16  ;;  %v728_v20 = vsub.f32 %v726_v49, %v727_v52 }
 0x12e   :  { %498 = vmatmul.f32.vlgmr.msrb.gmra.mxu0 %v497_v21  ;;  %596 = vmatmul.f32.vlgmr.msrb.gmra.mxu3 %v495_v13 }
 0x12f   :  { %615 = vmatpush.xpose.msra.mxu0 %v516_v58  ;;  %531 = vmatpush.xpose.msrb.mxu1 %v530_v22  ;;  %v872_v58 = vld [vmem:[#allocation10] sm:$0xff]  ;;  %v729_v21 = vand.u32 4294901760, %v728_v20 }
 0x130   :  { %569 = vmatmul.f32.vlgmr.msrb.gmra.mxu2 %v494_v7  ;;  %v876_v62 = vmul.f32 %v872_v58, %v422_v35  ;;  %718 = vmatpush.msra.mxu3 %v717_v17 }
 0x131   :  { %685 = vmatpush.msra.mxu2 %v1333_v38 }
 0x132   :  { %v1372_v1 = vand.u32 4294901760, %v876_v62 }
 0x133   :  { %619 = vmatpush.xpose.msra.mxu0 %v522_v2  ;;  %537 = vmatpush.xpose.msrb.mxu1 %v536_v24  ;;  %v1376_v2 = vsub.f32 %v877_v61, %v1370_v0 }
 0x134   :  { %687 = vmatpush.msra.mxu2 %v1339_v41  ;;  %v1381_v3 = vsub.f32 %v876_v62, %v1372_v1 }
 0x135   :  { %v938_v30 = vand.u32 4294901760, %v1376_v2 }
 0x136   :  { %539 = vmatmul.f32.vlgmr.msrb.gmra.mxu1 %v493_v5  ;;  %689 = vmatpush.msra.mxu2 %v1345_v46  ;;  %v944_v34 = vand.u32 4294901760, %v1381_v3 }
 0x137   :  { %623 = vmatpush.xpose.msra.mxu0 %v528_v18  ;;  %646 = vmatpush.xpose.msra.mxu1 %v485_v56  ;;  %v733_v56 = vand.u32 4294901760, %v732_v53  ;;  %v722_v18 = vsub.f32 %v720_v45, %v721_v48  ;;  %v939_v37 = vsub.f32 %v1376_v2, %v938_v30 }
 0x138   :  { %691 = vmatpush.msra.mxu2 %v1350_v50 }
 0x139   :  { %v734_v22 = vsub.f32 %v732_v53, %v733_v56  ;;  %v940_v42 = vand.u32 4294901760, %v939_v37 }
 0x13a   :  { %756 = vmatpush.msrb.mxu2 %v1336_v40  ;;  %v945_v40 = vsub.f32 %v1381_v3, %v944_v34 }
 0x13b   :  { %627 = vmatpush.xpose.msra.mxu0 %v534_v19  ;;  %648 = vmatpush.xpose.msra.mxu1 %v487_v63  ;;  %v1367_v63 = vsub.f32 %v878_v55, %v1363_v60  ;;  %v723_v19 = vand.u32 4294901760, %v722_v18  ;;  %v735_v23 = vand.u32 4294901760, %v734_v22 }
 0x13c   :  { %759 = vmatpush.msrb.mxu2 %v720_v45 }
 0x13d   :  { %724 = vmatpush.msra.mxu3 %v723_v19  ;;  %v932_v28 = vand.u32 4294901760, %v1367_v63 }
 0x13e   :  { %629 = vmatmul.f32.vlgmr.msra.gmra.mxu0 %v493_v5  ;;  %762 = vmatpush.msrb.mxu2 %v726_v49 }
 0x13f   :  { %650 = vmatpush.xpose.msra.mxu1 %v489_v14  ;;  %814 = vmatpush.msrb.mxu0 %v715_v44  ;;  %v933_v33 = vsub.f32 %v1367_v63, %v932_v28  ;;  %v946_v44 = vand.u32 4294901760, %v945_v40 }
 0x140   :  { %765 = vmatpush.msrb.mxu2 %v732_v53  ;;  %730 = vmatpush.msra.mxu3 %v729_v21 }
 0x141   :  { %818 = vmatpush.msrb.mxu0 %v721_v48  ;;  %v934_v39 = vand.u32 4294901760, %v933_v33 }
 0x142   :  { %736 = vmatpush.msra.mxu3 %v735_v23 }
 0x143   :  { %652 = vmatpush.xpose.msra.mxu1 %v491_v12  ;;  %822 = vmatpush.msrb.mxu0 %v727_v52 }
 0x144   :  { %785 = vmatpush.msrb.mxu3 %v1333_v38 }
 0x145   :  { %826 = vmatpush.msrb.mxu0 %v733_v56 }
 0x146   :  { %654 = vmatmul.f32.vlgmr.msra.gmra.mxu1 %v493_v5  ;;  %787 = vmatpush.msrb.mxu3 %v1339_v41 }
 0x147   :  { %845 = vmatpush.msrb.mxu1 %v1333_v38  ;;  %967 = vmatpush.msra.mxu0 %v1361_v59 }
 0x148   :  { %789 = vmatpush.msrb.mxu3 %v1345_v46 }
 0x149   :  { %847 = vmatpush.msrb.mxu1 %v1339_v41  ;;  %970 = vmatpush.msra.mxu0 %v1367_v63 }
 0x14a   :  { %791 = vmatpush.msrb.mxu3 %v1350_v50 }
 0x14b   :  { %849 = vmatpush.msrb.mxu1 %v1345_v46  ;;  %973 = vmatpush.msra.mxu0 %v1376_v2 }
 0x14d   :  { %851 = vmatpush.msrb.mxu1 %v1350_v50  ;;  %976 = vmatpush.msra.mxu0 %v1381_v3 }
 0x14f   :  { %996 = vmatpush.msra.mxu1 %v1352_v51 }
 0x151   :  { %998 = vmatpush.msra.mxu1 %v1363_v60 }
 0x153   :  { %1000 = vmatpush.msra.mxu1 %v1370_v0 }
 0x155   :  { %1002 = vmatpush.msra.mxu1 %v1372_v1 }
 0x1ab   :  { %v499_v4 = vpop.f32.mrf.mxu0 }
 0x1b1   :  { %v597_v9 = vpop.f32.mrf.mxu3 }
 0x1b3   :  { %v540_v5 = vpop.f32.mrf.mxu1  ;;  %v570_v7 = vpop.f32.mrf.mxu2 }
 0x1b4   :  { %v541_v6 = vadd.f32 %v540_v5, %v499_v4 }
 0x1b6   :  { %v571_v8 = vadd.f32 %v570_v7, %v541_v6 }
 0x1b8   :  { %v598_v10 = vadd.f32 %v597_v9, %v571_v8 }
 0x1bb   :  { %v630_v11 = vpop.f32.mrf.mxu0 }
 0x1bc   :  { %v631_v12 = vadd.f32 %v630_v11, %v598_v10 }
 0x1c3   :  { %v655_v13 = vpop.f32.mrf.mxu1 }
 0x1c4   :  { %v656_v14 = vadd.f32 %v655_v13, %v631_v12 }
 0x1c6   :  { %v659_v15 = vsel %vm658_vm2, %v656_v14, -inf }
 0x1c7   :  { %660 = vmax.xlane.f32.xlu2 %v659_v15 }
 0x23a   :  { %v661_v24 = vpop.xlane.xlu2 %660 }
 0x23b   :  { %v662_v25 = vsub.f32 %v656_v14, %v661_v24 }
 0x23d   :  { %v663_v26 = vmul.f32 1.442695, %v662_v25 }
 0x23f   :  { %1099 = vpow2.f32 %v663_v26 }
 0x245   :  { %v1395_v31 = vpop.eup %1099 }
 0x246   :  { %v670_v32 = vsel %vm658_vm2, %v1395_v31, 0 }
 0x247   :  { %v692_v35 = vand.u32 4294901760, %v670_v32 }
 0x249   :  { %v693_v38 = vsub.f32 %v670_v32, %v692_v35  ;;  %738 = vmatmul.f32.vlgmr.msra.gmra.mxu3 %v692_v35  ;;  %828 = vmatmul.f32.vlgmr.msrb.gmra.mxu0 %v692_v35 }
 0x24a   :  { %853 = vmatmul.f32.vlgmr.msrb.gmra.mxu1 %v692_v35  ;;  %929 = vmatpush.msra.mxu3 %v928_v36 }
 0x24b   :  { %v694_v41 = vand.u32 4294901760, %v693_v38 }
 0x24c   :  { %935 = vmatpush.msra.mxu3 %v934_v39 }
 0x24d   :  { %v695_v43 = vsub.f32 %v693_v38, %v694_v41 }
 0x24e   :  { %941 = vmatpush.msra.mxu3 %v940_v42 }
 0x24f   :  { %v696_v45 = vand.u32 4294901760, %v695_v43 }
 0x250   :  { %947 = vmatpush.msra.mxu3 %v946_v44 }
 0x251   :  { %697 = vmatmul.f32.vlgmr.msra.gmra.mxu2 %v696_v45  ;;  %795 = vmatmul.f32.vlgmr.msrb.gmra.mxu3 %v694_v41 }
 0x252   :  { %896 = vmatpush.msra.mxu2 %v1352_v51  ;;  %1056 = vmatpush.msrb.mxu3 %v1352_v51 }
 0x254   :  { %898 = vmatpush.msra.mxu2 %v1363_v60  ;;  %1058 = vmatpush.msrb.mxu3 %v1363_v60 }
 0x256   :  { %900 = vmatpush.msra.mxu2 %v1370_v0  ;;  %1060 = vmatpush.msrb.mxu3 %v1370_v0 }
 0x258   :  { %902 = vmatpush.msra.mxu2 %v1372_v1  ;;  %1062 = vmatpush.msrb.mxu3 %v1372_v1 }
 0x259   :  { %768 = vmatmul.f32.vlgmr.msrb.gmra.mxu2 %v693_v38 }
 0x25a   :  { %1025 = vmatpush.msrb.mxu2 %v926_v27 }
 0x25c   :  { %1029 = vmatpush.msrb.mxu2 %v932_v28 }
 0x25e   :  { %1033 = vmatpush.msrb.mxu2 %v938_v30 }
 0x260   :  { %1037 = vmatpush.msrb.mxu2 %v944_v34 }
 0x2c6   :  { %v829_v53 = vpop.f32.mrf.mxu0 }
 0x2c7   :  { %v854_v55 = vpop.f32.mrf.mxu1 }
 0x2cc   :  { %v739_v46 = vpop.f32.mrf.mxu3 }
 0x2d4   :  { %v698_v47 = vpop.f32.mrf.mxu2  ;;  %v796_v51 = vpop.f32.mrf.mxu3 }
 0x2d5   :  { %v740_v48 = vadd.f32 %v739_v46, %v698_v47 }
 0x2dc   :  { %v769_v49 = vpop.f32.mrf.mxu2 }
 0x2dd   :  { %v770_v50 = vadd.f32 %v769_v49, %v740_v48 }
 0x2df   :  { %v797_v52 = vadd.f32 %v796_v51, %v770_v50 }
 0x2e1   :  { %v830_v54 = vadd.f32 %v829_v53, %v797_v52 }
 0x2e3   :  { %v855_v56 = vadd.f32 %v854_v55, %v830_v54 }
 0x2e5   :  { %1101 = vrcp.f32 %v855_v56  ;;  %v868_v60 = vand.u32 2147483648, %v855_v56  ;;  %v866_v62 = vand.u32 2147483647, %v855_v56  ;;  %vm862_vm4 = vweird.f32 %v855_v56 }
 0x2e7   :  { %v869_v0 = vor.u32 1.1754944e-38, %v868_v60  ;;  %vm867_vm6 = vcmp.eq.f32.partialorder %v866_v62, 8.507059e+37 }
 0x2eb   :  { %v1102_v57 = vpop.eup %1101 }
 0x2ec   :  { %v858_v58 = vmul.f32 %v1102_v57, %v855_v56  ;;  %vm863_vm3 = vweird.f32 %v1102_v57 }
 0x2ed   :  { %vm864_vm5 = vmor %vm862_vm4, %vm863_vm3 }
 0x2ee   :  { %v859_v59 = vsub.f32 1.0, %v858_v58 }
 0x2f0   :  { %v860_v61 = vmul.f32 %v1102_v57, %v859_v59 }
 0x2f2   :  { %v861_v63 = vadd.f32 %v1102_v57, %v860_v61 }
 0x2f4   :  { %v865_v1 = vsel %vm864_vm5, %v1102_v57, %v861_v63 }
 0x2f5   :  { %v870_v2 = vsel %vm867_vm6, %v869_v0, %v865_v1 }
 0x2f6   :  { %v871_v3 = vmul.f32 %v1395_v31, %v870_v2 }
 0x2f8   :  { %v881_v4 = vsel %vm658_vm2, %v871_v3, 0 }
 0x2f9   :  { %v903_v5 = vand.u32 4294901760, %v881_v4 }
 0x2fb   :  { %949 = vmatmul.f32.vlgmr.msra.gmra.mxu3 %v903_v5  ;;  %v904_v6 = vsub.f32 %v881_v4, %v903_v5 }
 0x2fd   :  { %979 = vmatmul.f32.vlgmr.msra.gmra.mxu0 %v904_v6  ;;  %v905_v7 = vand.u32 4294901760, %v904_v6 }
 0x2ff   :  { %1006 = vmatmul.f32.vlgmr.msra.gmra.mxu1 %v905_v7  ;;  %v906_v8 = vsub.f32 %v904_v6, %v905_v7 }
 0x301   :  { %v907_v9 = vand.u32 4294901760, %v906_v8 }
 0x303   :  { %908 = vmatmul.f32.vlgmr.msra.gmra.mxu2 %v907_v9  ;;  %1064 = vmatmul.f32.vlgmr.msrb.gmra.mxu3 %v903_v5 }
 0x30b   :  { %1039 = vmatmul.f32.vlgmr.msrb.gmra.mxu2 %v903_v5 }
 0x37a   :  { %v980_v13 = vpop.f32.mrf.mxu0 }
 0x37c   :  { %v1007_v15 = vpop.f32.mrf.mxu1 }
 0x37e   :  { %v950_v10 = vpop.f32.mrf.mxu3 }
 0x386   :  { %v909_v11 = vpop.f32.mrf.mxu2  ;;  %v1065_v19 = vpop.f32.mrf.mxu3 }
 0x387   :  { %v951_v12 = vadd.f32 %v950_v10, %v909_v11 }
 0x389   :  { %v981_v14 = vadd.f32 %v980_v13, %v951_v12 }
 0x38b   :  { %v1008_v16 = vadd.f32 %v1007_v15, %v981_v14 }
 0x38e   :  { %v1040_v17 = vpop.f32.mrf.mxu2 }
 0x38f   :  { %v1041_v18 = vadd.f32 %v1040_v17, %v1008_v16 }
 0x391   :  { %v1066_v20 = vadd.f32 %v1065_v19, %v1041_v18 }
 0x393   :  { %1068 = vst [vmem:[#allocation11] sm:$0xff] %v1066_v20 }
 0x394   :  { %1079 = dma.vmem_to_hbm [thread:$0]  %s1075_s19, 128, %s1077_s22, [#allocation4]  }
 0x395   :  { %1253 = dma.done.wait [#allocation4], 128  }
 0x396   :  { %1254 = vsyncadd [#allocation4], 4294967168 }
 0x397   :  { %1084 = vsyncpa [#allocation3], 1 }
 0x398   :  { %1085 = vsyncpa [#allocation6], 1 }
 0x399   :  { %1086 = vsyncpa [#allocation9], 1 }
 0x39a   :  { %1087 = vsyncpa [#allocation4], 1 }

</bundles_post_ra>
